<compile_context>
chip_gen: v7x
topology: tpu7x:2x2x1
jax: 0.10.0
libtpu: 0.0.40
codegen_flags: <defaults>
</compile_context>

<pallas_src>
import jax
import jax.numpy as jnp
from jax.experimental import pallas as pl
from jax.experimental.pallas import tpu as pltpu


def _round_up(n, m):
    return ((n + m - 1) // m) * m


def _mlp_softmax_kernel(x_ref, w1_ref, b1_ref, w2_ref, b2_ref, o_ref):
    # x:  (TB, 784) bf16   w1: (784, Wp) bf16   b1: (1, Wp) f32
    # w2: (Wp, 10)  f32    b2: (1, 10)   f32    o : (TB, 10) f32
    x = x_ref[...]

    # layer1: Linear(784 -> Wp), f32 accumulation on the MXU
    h = jnp.dot(x, w1_ref[...], preferred_element_type=jnp.float32) + b1_ref[...]
    h = jnp.maximum(h, 0.0)  # ReLU

    # fc1: Linear(Wp -> 10); padded w2 rows are zero, so width padding is exact.
    logits = jnp.dot(h, w2_ref[...], preferred_element_type=jnp.float32) + b2_ref[...]

    # softmax over classes (dim=1), numerically stable, divide via EUP reciprocal.
    m = jnp.max(logits, axis=1, keepdims=True)
    e = jnp.exp(logits - m)
    denom = jnp.sum(e, axis=1, keepdims=True)
    o_ref[...] = (e * pl.reciprocal(denom, approx=True)).astype(o_ref.dtype)


def baseline_model_forward(x_nchw, w1, b1, w2, b2, *, batch_tile=1024):
    """x_nchw: (B, 1, 28, 28). Returns (B, 10) float32 softmax probabilities."""
    B = x_nchw.shape[0]
    in_dim = 28 * 28
    width = w1.shape[1]
    n_cls = w2.shape[1]

    # Flatten exactly like torch .view(-1, 784); bf16 activations halve HBM traffic.
    x = x_nchw.reshape(B, in_dim).astype(jnp.bfloat16)

    # Zero-pad hidden width to a lane-dense multiple of 128 (mathematically exact).
    Wp = _round_up(max(width, 128), 128)
    if Wp != width:
        w1 = jnp.pad(w1, ((0, 0), (0, Wp - width)))
        b1 = jnp.pad(b1, (0, Wp - width))
        w2 = jnp.pad(w2, ((0, Wp - width), (0, 0)))
    w1 = w1.astype(jnp.bfloat16)
    b1 = b1.reshape(1, Wp).astype(jnp.float32)
    w2 = w2.astype(jnp.float32)
    b2 = b2.reshape(1, n_cls).astype(jnp.float32)

    # Batch tile: multiple of 8, capped so double-buffers fit every generation's
    # default scoped VMEM without touching vmem_limit_bytes.
    TB = min(batch_tile, _round_up(B, 8))
    B_pad = _round_up(B, TB)
    if B_pad != B:
        x = jnp.pad(x, ((0, B_pad - B), (0, 0)))
    n_tiles = B_pad // TB

    cost = pl.CostEstimate(
        flops=2 * B_pad * in_dim * Wp + 2 * B_pad * Wp * n_cls,
        transcendentals=B_pad * (n_cls + 1),
        bytes_accessed=(B_pad * in_dim * 2            # x (bf16)
                        + in_dim * Wp * 2             # w1 (bf16)
                        + (Wp + Wp * n_cls + n_cls) * 4  # b1, w2, b2 (f32)
                        + B_pad * n_cls * 4),         # output (f32)
    )

    out = pl.pallas_call(
        _mlp_softmax_kernel,
        out_shape=jax.ShapeDtypeStruct((B_pad, n_cls), jnp.float32),
        grid=(n_tiles,),
        in_specs=[
            pl.BlockSpec((TB, in_dim), lambda i: (i, 0)),   # x: streamed over batch
            pl.BlockSpec((in_dim, Wp), lambda i: (0, 0)),   # w1: resident in VMEM
            pl.BlockSpec((1, Wp), lambda i: (0, 0)),        # b1: resident
            pl.BlockSpec((Wp, n_cls), lambda i: (0, 0)),    # w2: resident
            pl.BlockSpec((1, n_cls), lambda i: (0, 0)),     # b2: resident
        ],
        out_specs=pl.BlockSpec((TB, n_cls), lambda i: (i, 0)),
        compiler_params=pltpu.CompilerParams(
            dimension_semantics=("parallel",)),             # megacore split on v7x
        cost_estimate=cost,
    )(x, w1, b1, w2, b2)
    return out[:B]


def reference_forward(x_nchw, w1, b1, w2, b2):
    """Pure-JAX reference using the same bf16 input casts (f32 accumulation)."""
    B = x_nchw.shape[0]
    x = x_nchw.reshape(B, 28 * 28).astype(jnp.bfloat16)
    h = jnp.dot(x, w1.astype(jnp.bfloat16), preferred_element_type=jnp.float32) + b1
    h = jnp.maximum(h, 0.0)
    logits = jnp.dot(h, w2.astype(jnp.float32),
                     preferred_element_type=jnp.float32) + b2
    return jax.nn.softmax(logits, axis=1)


def init_params(key, width):
    """Deterministic init matching PyTorch Linear default shapes.
    PyTorch stores weight as (out, in); we store the transpose (in, out)."""
    k1, k2, k3, k4 = jax.random.split(key, 4)
    in1, out1 = 28 * 28, width
    in2, out2 = width, 10
    bound1 = 1.0 / jnp.sqrt(in1)
    bound2 = 1.0 / jnp.sqrt(in2)
    w1 = jax.random.uniform(k1, (in1, out1), jnp.float32, -bound1, bound1)
    b1 = jax.random.uniform(k2, (out1,), jnp.float32, -bound1, bound1)
    w2 = jax.random.uniform(k3, (in2, out2), jnp.float32, -bound2, bound2)
    b2 = jax.random.uniform(k4, (out2,), jnp.float32, -bound2, bound2)
    return w1, b1, w2, b2


if __name__ == "__main__":
    key = jax.random.PRNGKey(0)
    k_x, k_p = jax.random.split(key)

    B, width = 8, 32
    x = jax.random.normal(k_x, (B, 1, 28, 28), jnp.float32)  # NCHW like PyTorch
    w1, b1, w2, b2 = init_params(k_p, width)

    probs = baseline_model_forward(x, w1, b1, w2, b2)
    probs = jax.block_until_ready(probs)

    # sanity: shape, softmax rows sum to 1 (approx-reciprocal tolerance), matches ref
    assert probs.shape == (B, 10)
    assert jnp.allclose(jnp.sum(probs, axis=1), 1.0, atol=5e-3)
    ref = reference_forward(x, w1, b1, w2, b2)
    assert jnp.allclose(probs, ref, atol=5e-3)

    print("KERNEL_OK")
</pallas_src>

<mosaic_0001>
module attributes {stable_mosaic.version = 11 : i64} {
  func.func @_mlp_softmax_kernel(%arg0: i32, %arg1: memref<8x784xbf16, #tpu.memory_space<vmem>>, %arg2: memref<784x128xbf16, #tpu.memory_space<vmem>>, %arg3: memref<1x128xf32, #tpu.memory_space<vmem>>, %arg4: memref<128x10xf32, #tpu.memory_space<vmem>>, %arg5: memref<1x10xf32, #tpu.memory_space<vmem>>, %arg6: memref<8x10xf32, #tpu.memory_space<vmem>>) attributes {dimension_semantics = [#tpu.dimension_semantics<parallel>], iteration_bounds = array<i64: 1>, scalar_prefetch = 0 : i64, scratch_operands = 0 : i64, tpu.core_type = #tpu.core_type<tc>, window_params = [{transform_indices = @transform_0, window_bounds = array<i64: 8, 784>}, {pipeline_mode = #tpu.pipeline_mode<synchronous>, transform_indices = @transform_1, window_bounds = array<i64: 784, 128>}, {pipeline_mode = #tpu.pipeline_mode<synchronous>, transform_indices = @transform_2, window_bounds = array<i64: 1, 128>}, {pipeline_mode = #tpu.pipeline_mode<synchronous>, transform_indices = @transform_3, window_bounds = array<i64: 128, 10>}, {pipeline_mode = #tpu.pipeline_mode<synchronous>, transform_indices = @transform_4, window_bounds = array<i64: 1, 10>}, {transform_indices = @transform_5, window_bounds = array<i64: 8, 10>}]} {
    %c0 = arith.constant 0 : index
    %c0_0 = arith.constant 0 : index
    %0 = vector.load %arg1[%c0, %c0_0] : memref<8x784xbf16, #tpu.memory_space<vmem>>, vector<8x784xbf16>
    %c0_1 = arith.constant 0 : index
    %c0_2 = arith.constant 0 : index
    %1 = vector.load %arg2[%c0_1, %c0_2] : memref<784x128xbf16, #tpu.memory_space<vmem>>, vector<784x128xbf16>
    %cst = arith.constant dense<0.000000e+00> : vector<8x128xf32>
    %2 = tpu.matmul %0, %1, %cst {dimension_numbers = #tpu.dot_dimension_numbers<[1], [0], [0], [1], [0, 0, 1, 1], [], []>} : vector<8x784xbf16>, vector<784x128xbf16>, vector<8x128xf32> -> vector<8x128xf32>
    %c0_3 = arith.constant 0 : index
    %c0_4 = arith.constant 0 : index
    %3 = vector.load %arg3[%c0_3, %c0_4] : memref<1x128xf32, #tpu.memory_space<vmem>>, vector<1x128xf32>
    %4 = vector.broadcast %3 : vector<1x128xf32> to vector<8x128xf32>
    %5 = arith.addf %2, %4 : vector<8x128xf32>
    %cst_5 = arith.constant 0.000000e+00 : f32
    %6 = vector.broadcast %cst_5 : f32 to vector<8x128xf32>
    %7 = arith.maximumf %5, %6 : vector<8x128xf32>
    %c0_6 = arith.constant 0 : index
    %c0_7 = arith.constant 0 : index
    %8 = vector.load %arg4[%c0_6, %c0_7] : memref<128x10xf32, #tpu.memory_space<vmem>>, vector<128x10xf32>
    %cst_8 = arith.constant dense<0.000000e+00> : vector<8x10xf32>
    %9 = tpu.matmul %7, %8, %cst_8 {dimension_numbers = #tpu.dot_dimension_numbers<[1], [0], [0], [1], [0, 0, 1, 1], [], []>} : vector<8x128xf32>, vector<128x10xf32>, vector<8x10xf32> -> vector<8x10xf32>
    %c0_9 = arith.constant 0 : index
    %c0_10 = arith.constant 0 : index
    %10 = vector.load %arg5[%c0_9, %c0_10] : memref<1x10xf32, #tpu.memory_space<vmem>>, vector<1x10xf32>
    %11 = vector.broadcast %10 : vector<1x10xf32> to vector<8x10xf32>
    %12 = arith.addf %9, %11 : vector<8x10xf32>
    %cst_11 = arith.constant dense<0xFF800000> : vector<8xf32>
    %13 = vector.multi_reduction <maximumf>, %12, %cst_11 [1] : vector<8x10xf32> to vector<8xf32>
    %14 = vector.shape_cast %13 : vector<8xf32> to vector<8x1xf32>
    %15 = vector.broadcast %14 : vector<8x1xf32> to vector<8x10xf32>
    %16 = arith.subf %12, %15 : vector<8x10xf32>
    %17 = math.exp %16 : vector<8x10xf32>
    %cst_12 = arith.constant dense<0.000000e+00> : vector<8xf32>
    %18 = vector.multi_reduction <add>, %17, %cst_12 [1] : vector<8x10xf32> to vector<8xf32>
    %19 = vector.shape_cast %18 : vector<8xf32> to vector<8x1xf32>
    %20 = tpu.reciprocal %19 {approx = true} : vector<8x1xf32> -> vector<8x1xf32>
    %21 = vector.broadcast %20 : vector<8x1xf32> to vector<8x10xf32>
    %22 = arith.mulf %17, %21 : vector<8x10xf32>
    %c0_13 = arith.constant 0 : index
    %c0_14 = arith.constant 0 : index
    %23 = vector.load %arg6[%c0_13, %c0_14] : memref<8x10xf32, #tpu.memory_space<vmem>>, vector<8x10xf32>
    tpu.vector_store %arg6[%c0_13, %c0_14], %22 {strides = array<i32>} : memref<8x10xf32, #tpu.memory_space<vmem>>, vector<8x10xf32>,
    return
  }
  func.func @transform_0(%arg0: i32) -> (i32, i32) {
    %c0_i32 = arith.constant 0 : i32
    %c0_i32_0 = arith.constant 0 : i32
    return %arg0, %c0_i32 : i32, i32
  }
  func.func @transform_1(%arg0: i32) -> (i32, i32) {
    %c0_i32 = arith.constant 0 : i32
    %c0_i32_0 = arith.constant 0 : i32
    %c0_i32_1 = arith.constant 0 : i32
    return %c0_i32, %c0_i32_0 : i32, i32
  }
  func.func @transform_2(%arg0: i32) -> (i32, i32) {
    %c0_i32 = arith.constant 0 : i32
    %c0_i32_0 = arith.constant 0 : i32
    %c0_i32_1 = arith.constant 0 : i32
    return %c0_i32, %c0_i32_0 : i32, i32
  }
  func.func @transform_3(%arg0: i32) -> (i32, i32) {
    %c0_i32 = arith.constant 0 : i32
    %c0_i32_0 = arith.constant 0 : i32
    %c0_i32_1 = arith.constant 0 : i32
    return %c0_i32, %c0_i32_0 : i32, i32
  }
  func.func @transform_4(%arg0: i32) -> (i32, i32) {
    %c0_i32 = arith.constant 0 : i32
    %c0_i32_0 = arith.constant 0 : i32
    %c0_i32_1 = arith.constant 0 : i32
    return %c0_i32, %c0_i32_0 : i32, i32
  }
  func.func @transform_5(%arg0: i32) -> (i32, i32) {
    %c0_i32 = arith.constant 0 : i32
    %c0_i32_0 = arith.constant 0 : i32
    return %arg0, %c0_i32 : i32, i32
  }
}

</mosaic_0001>

<bundles_post_ra>
// kernel: tpu_custom_call.1
= control target key start
LH: loop header
LB: loop body
LE: loop exit
PB: predicated region body
PF: predicated region fallthrough
CT: control target
= control target key end

     0   :  { %10 = vsyncpa [#allocation3], 0  ;;  %s1205_s0 = inlined_call_operand.vmem [shape: bf16[8,784], index: 0, kind: input, shape index: {}]   ;;  %s1206_s1 = inlined_call_operand.hbm [shape: bf16[784,128], index: 1, kind: input, shape index: {}]   ;;  %s1207_s2 = inlined_call_operand.vmem [shape: f32[1,128], index: 2, kind: input, shape index: {}]   ;;  %s1208_s3 = inlined_call_operand.vmem [shape: f32[128,10], index: 3, kind: input, shape index: {}]   ;;  %s1209_s4 = inlined_call_operand.vmem [shape: f32[1,10], index: 4, kind: input, shape index: {}]   ;;  %s1210_s5 = inlined_call_operand.hbm [shape: f32[8,10], index: 5, kind: output, shape index: {}]  }
   0x1   :  { %11 = vsyncpa [#allocation4], 0  ;;  %s1073_s18 = smov [#allocation2]   ;;  %s1025_s22 = scalar_lea.hbm %s1206_s1, 6272 }
   0x2   :  { %s19_s19 = sshll.u32 %s1073_s18, 4  ;;  %p1026_p0 = scmp.ne.s32.totalorder %s1206_s1, %s1025_s22  ;;  %s20_s19 = int_to_ptr.vmem [resolvable:$true] %s19_s19 }
   0x3   :  { %p1029_p1 = scmp.lt.u32.totalorder %s1025_s22, %s1206_s1 }
   0x5   :  { %p1031_p2 = pnand %p1029_p1, %p1026_p0 }
   0x7   :  { %1034 = shalt.err (!%p1031_p2)
}
   0x8   :  { %s1035_s27 = scalar_lea.vmem %s20_s19, 6272  ;;  %p1040_p4 = scmp.lt.s32.totalorder %s20_s19, %s20_s19 }
   0x9   :  { %p1036_p3 = scmp.ne.s32.totalorder %s20_s19, %s1035_s27  ;;  %p1041_p5 = scmp.lt.s32.totalorder %s1035_s27, %s1035_s27 }
   0xb   :  { %p1042_p6 = por %p1041_p5, %p1040_p4 }
   0xd   :  { %p1043_p7 = pnand %p1042_p6, %p1036_p3 }
   0xf   :  { %1046 = shalt.err (!%p1043_p7)
}
  0x10   :  { %s1074_s28 = smov 64   ;;  %s1075_s29 = smov 4  }
  0x11   :  { %25 = dma.hbm_to_vmem [thread:$0]  %s1206_s1, 6272, %s20_s19, [#allocation3], %s1074_s28, %s1074_s28, %s1075_s29  }
  0x12   :  { %1069 = dma.done.wait [#allocation3], 6272  }
  0x13   :  { %1070 = vsyncadd [#allocation3], 4294961024  ;;  %v965_v0 = vld [vmem:[#allocation2 + $0x40] sm:$0xff]   ;;  %v969_v4 = vld [vmem:[#allocation2 + $0x48] sm:$0xff]   ;;  %v1076_v43 = vmov 0.0   ;;  %vm1077_vm0 = vmmov 0  }
  0x14   :  { %v966_v1 = vld [vmem:[#allocation2] sm:$0xff]   ;;  %808 = vmatprep.subr.bf16.mxu0 %v965_v0  ;;  %v970_v5 = vld [vmem:[#allocation2 + $0x8] sm:$0xff]   ;;  %v973_v8 = vld [vmem:[#allocation2 + $0x50] sm:$0xff]   ;;  %vm463_vm1 = vcmask 130048   ;;  %v1078_v63 = vmov 0.0|0.0   ;;  %vm721_vm2 = vcmask 80896  }
  0x15   :  { %v967_v2 = vld [vmem:[#allocation2 + $0xc0] sm:$0xff]   ;;  %809 = vmatpush3.bf16.msra.mxu0 %v966_v1  ;;  %v971_v6 = vld [vmem:[#allocation2 + $0xc8] sm:$0xff]   ;;  %v974_v9 = vld [vmem:[#allocation2 + $0x10] sm:$0xff]   ;;  %s1079_s20 = smov [#allocation5]  }
  0x16   :  { %v968_v3 = vld [vmem:[#allocation2 + $0x80] sm:$0xff]   ;;  %830 = vmatprep.subr.bf16.mxu1 %v967_v2  ;;  %810 = vmatprep.subr.bf16.mxu0 %v969_v4  ;;  %v972_v7 = vld [vmem:[#allocation2 + $0x88] sm:$0xff]   ;;  %v975_v10 = vld [vmem:[#allocation2 + $0xd0] sm:$0xff]   ;;  %s740_s21 = sshll.u32 %s1079_s20, 4  ;;  %s741_s21 = int_to_ptr.vmem [resolvable:$true] %s740_s21 }
  0x17   :  { %831 = vmatpush3.bf16.msra.mxu1 %v968_v3  ;;  %v976_v11 = vld [vmem:[#allocation2 + $0x90] sm:$0xff]   ;;  %v977_v12 = vld [vmem:[#allocation2 + $0x58] sm:$0xff]   ;;  %v981_v16 = vld [vmem:[#allocation2 + $0x60] sm:$0xff]   ;;  %p1052_p9 = scmp.lt.s32.totalorder %s741_s21, %s741_s21 }
  0x18   :  { %832 = vmatprep.subr.bf16.mxu1 %v971_v6  ;;  %v978_v13 = vld [vmem:[#allocation2 + $0x18] sm:$0xff]   ;;  %v982_v17 = vld [vmem:[#allocation2 + $0x20] sm:$0xff]   ;;  %v985_v20 = vld [vmem:[#allocation2 + $0x68] sm:$0xff]  }
  0x19   :  { %811 = vmatpush3.bf16.msra.mxu0 %v970_v5  ;;  %v979_v14 = vld [vmem:[#allocation2 + $0xd8] sm:$0xff]   ;;  %v983_v18 = vld [vmem:[#allocation2 + $0xe0] sm:$0xff]   ;;  %v986_v21 = vld [vmem:[#allocation2 + $0x28] sm:$0xff]  }
  0x1a   :  { %812 = vmatprep.subr.bf16.mxu0 %v973_v8  ;;  %v980_v15 = vld [vmem:[#allocation2 + $0x98] sm:$0xff]   ;;  %v984_v19 = vld [vmem:[#allocation2 + $0xa0] sm:$0xff]   ;;  %v987_v22 = vld [vmem:[#allocation2 + $0xe8] sm:$0xff]  }
  0x1b   :  { %833 = vmatpush3.bf16.msra.mxu1 %v972_v7  ;;  %v988_v23 = vld [vmem:[#allocation2 + $0xa8] sm:$0xff]   ;;  %v989_v24 = vld [vmem:[#allocation2 + $0x70] sm:$0xff]   ;;  %v993_v28 = vld [vmem:[#allocation2 + $0x78] sm:$0xff]  }
  0x1c   :  { %834 = vmatprep.subr.bf16.mxu1 %v975_v10  ;;  %v990_v25 = vld [vmem:[#allocation2 + $0x30] sm:$0xff]   ;;  %v994_v29 = vld [vmem:[#allocation2 + $0x38] sm:$0xff]   ;;  %v36_v31 = vld [vmem:[%s1205_s0] sm:$0xff] }
  0x1d   :  { %813 = vmatpush3.bf16.msra.mxu0 %v974_v9  ;;  %v991_v26 = vld [vmem:[#allocation2 + $0xf0] sm:$0xff]   ;;  %v995_v30 = vld [vmem:[#allocation2 + $0xf8] sm:$0xff]   ;;  %v750_v32 = vcombine.low %v36_v31, %v36_v31  ;;  %v751_v33 = vcombine.high %v36_v31, %v36_v31  ;;  %v999_v35 = vld [vmem:[#allocation2 + $0x140] sm:$0xff]  }
  0x1e   :  { %814 = vmatprep.subr.bf16.mxu0 %v977_v12  ;;  %v992_v27 = vld [vmem:[#allocation2 + $0xb0] sm:$0xff]   ;;  %v998_v34 = vld [vmem:[#allocation2 + $0xb8] sm:$0xff]   ;;  %v37_v36 = vld [vmem:[%s1205_s0 + $0x8] sm:$0xff] }
  0x1f   :  { %835 = vmatpush3.bf16.msra.mxu1 %v976_v11  ;;  %499 = vmatprep.mubr.bf16.mxu0 %v751_v33  ;;  %v752_v37 = vcombine.low %v37_v36, %v37_v36  ;;  %v753_v38 = vcombine.high %v37_v36, %v37_v36  ;;  %v1002_v39 = vld [vmem:[#allocation2 + $0x100] sm:$0xff]   ;;  %v1003_v40 = vld [vmem:[#allocation2 + $0x148] sm:$0xff]   ;;  %v1005_v42 = vld [vmem:[#allocation2 + $0x150] sm:$0xff]  }
  0x20   :  { %836 = vmatprep.subr.bf16.mxu1 %v979_v14  ;;  %v1004_v41 = vld [vmem:[#allocation2 + $0x108] sm:$0xff]   ;;  %v1006_v44 = vld [vmem:[#allocation2 + $0x110] sm:$0xff]   ;;  %v1007_v45 = vld [vmem:[#allocation2 + $0x158] sm:$0xff]  }
  0x21   :  { %815 = vmatpush3.bf16.msra.mxu0 %v978_v13  ;;  %539 = vmatprep.mubr.bf16.mxu1 %v753_v38  ;;  %v1008_v46 = vld [vmem:[#allocation2 + $0x118] sm:$0xff]   ;;  %v1009_v47 = vld [vmem:[#allocation2 + $0x160] sm:$0xff]   ;;  %v1011_v49 = vld [vmem:[#allocation2 + $0x168] sm:$0xff]  }
  0x22   :  { %816 = vmatprep.subr.bf16.mxu0 %v981_v16  ;;  %v1010_v48 = vld [vmem:[#allocation2 + $0x120] sm:$0xff]   ;;  %v38_v51 = vld [vmem:[%s1205_s0 + $0x10] sm:$0xff]  ;;  %v1020_v53 = vld [vmem:[%s1205_s0 + $0x18] ss:$0 sps:$4 sm:$0xff]  }
  0x23   :  { %837 = vmatpush3.bf16.msra.mxu1 %v980_v15  ;;  %v1017_v50 = vld [vmem:[#allocation2 + $0x180] sm:$0xff]   ;;  %v755_v52 = vcombine.high %v38_v51, %v38_v51  ;;  %v1012_v54 = vld [vmem:[#allocation2 + $0x128] sm:$0xff]   ;;  %v1013_v55 = vld [vmem:[#allocation2 + $0x170] sm:$0xff]   ;;  %v754_v59 = vcombine.low %v38_v51, %v38_v51 }
  0x24   :  { %838 = vmatprep.subr.bf16.mxu1 %v983_v18  ;;  %v1014_v56 = vld [vmem:[#allocation2 + $0x130] sm:$0xff]   ;;  %v1015_v57 = vld [vmem:[#allocation2 + $0x178] sm:$0xff]   ;;  %v628_v60 = vld [vmem:[%s1208_s3] sm:$0xff] }
  0x25   :  { %817 = vmatpush3.bf16.msra.mxu0 %v982_v17  ;;  %v1016_v58 = vld [vmem:[#allocation2 + $0x138] sm:$0xff]   ;;  %v629_v61 = vld [vmem:[%s1208_s3 + $0x8] sm:$0xff]  ;;  %v630_v62 = vld [vmem:[%s1208_s3 + $0x10] sm:$0xff] }
  0x26   :  { %818 = vmatprep.subr.bf16.mxu0 %v985_v20  ;;  %v935_v0 = vpack.c.bf16 %v629_v61, %v628_v60  ;;  %v631_v1 = vld [vmem:[%s1208_s3 + $0x18] sm:$0xff]  ;;  %v632_v3 = vld [vmem:[%s1208_s3 + $0x20] sm:$0xff]  ;;  %v633_v4 = vld [vmem:[%s1208_s3 + $0x28] sm:$0xff] }
  0x27   :  { %839 = vmatpush3.bf16.msra.mxu1 %v984_v19  ;;  %v938_v2 = vpack.c.bf16 %v631_v1, %v630_v62  ;;  %v941_v5 = vpack.c.bf16 %v633_v4, %v632_v3  ;;  %v634_v6 = vld [vmem:[%s1208_s3 + $0x30] sm:$0xff]  ;;  %v635_v7 = vld [vmem:[%s1208_s3 + $0x38] sm:$0xff]  ;;  %v636_v9 = vld [vmem:[%s1208_s3 + $0x40] sm:$0xff] }
  0x28   :  { %840 = vmatprep.subr.bf16.mxu1 %v987_v22  ;;  %v944_v8 = vpack.c.bf16 %v635_v7, %v634_v6  ;;  %v637_v10 = vld [vmem:[%s1208_s3 + $0x48] sm:$0xff]  ;;  %v638_v12 = vld [vmem:[%s1208_s3 + $0x50] sm:$0xff]  ;;  %v639_v13 = vld [vmem:[%s1208_s3 + $0x58] sm:$0xff] }
  0x29   :  { %819 = vmatpush3.bf16.msra.mxu0 %v986_v21  ;;  %v947_v11 = vpack.c.bf16 %v637_v10, %v636_v9  ;;  %v950_v14 = vpack.c.bf16 %v639_v13, %v638_v12  ;;  %v640_v15 = vld [vmem:[%s1208_s3 + $0x60] sm:$0xff]  ;;  %v641_v16 = vld [vmem:[%s1208_s3 + $0x68] sm:$0xff]  ;;  %v642_v18 = vld [vmem:[%s1208_s3 + $0x70] sm:$0xff] }
  0x2a   :  { %820 = vmatprep.subr.bf16.mxu0 %v989_v24  ;;  %v953_v17 = vpack.c.bf16 %v641_v16, %v640_v15  ;;  %v643_v19 = vld [vmem:[%s1208_s3 + $0x78] sm:$0xff]  ;;  %v749_v22 = vld [vmem:[%s1207_s2] ss:$0 sm:$0xff] }
  0x2b   :  { %841 = vmatpush3.bf16.msra.mxu1 %v988_v23  ;;  %v956_v20 = vpack.c.bf16 %v643_v19, %v642_v18 }
  0x2c   :  { %842 = vmatprep.subr.bf16.mxu1 %v991_v26 }
  0x2d   :  { %821 = vmatpush3.bf16.msra.mxu0 %v990_v25 }
  0x2e   :  { %822 = vmatprep.subr.bf16.mxu0 %v993_v28 }
  0x2f   :  { %843 = vmatpush3.bf16.msra.mxu1 %v992_v27 }
  0x30   :  { %844 = vmatprep.subr.bf16.mxu1 %v995_v30 }
  0x31   :  { %823 = vmatpush3.bf16.msra.mxu0 %v994_v29 }
  0x32   :  { %852 = vmatprep.subr.bf16.mxu0 %v999_v35 }
  0x33   :  { %845 = vmatpush3.bf16.msra.mxu1 %v998_v34 }
  0x34   :  { %500 = vmatmul.mubr.bf16.vlgmr.msra.gmra.mrb[0].mxu0 %v750_v32  ;;  %893 = vmatprep.subr.bf16.mxu1 %v1076_v43 }
  0x35   :  { %853 = vmatpush3.bf16.msra.mxu0 %v1002_v39  ;;  %579 = vmatprep.mubr.bf16.mxu0 %v755_v52 }
  0x36   :  { %540 = vmatmul.mubr.bf16.vlgmr.msra.gmra.mrb[0].mxu1 %v752_v37  ;;  %854 = vmatprep.subr.bf16.mxu0 %v1003_v40 }
  0x37   :  { %895 = vmatprep.mubr.msk.bf16.mxu1 %vm1077_vm0, %v1076_v43  ;;  %894 = vmatpush3.bf16.msra.mxu1 %v1017_v50 }
  0x38   :  { %934 = vmatprep.subr.bf16.mxu1 %v1078_v63 }
  0x39   :  { %855 = vmatpush3.bf16.msra.mxu0 %v1004_v41 }
  0x3a   :  { %856 = vmatprep.subr.bf16.mxu0 %v1005_v42 }
  0x3d   :  { %857 = vmatpush3.bf16.msra.mxu0 %v1006_v44 }
  0x3e   :  { %858 = vmatprep.subr.bf16.mxu0 %v1007_v45  ;;  %896 = vmatmul.mubr.msk.bf16.vlgmr.msra.gmra.mrb[4].mxu1 %vm463_vm1, %v1020_v53 }
  0x3f   :  { %931 = vmatprep.mubr.msk.f32.mxu1 %vm1077_vm0, %v1076_v43  ;;  %936 = vmatpush3.bf16.msra.mxu1 %v935_v0 }
  0x40   :  { %937 = vmatprep.subr.bf16.mxu1 %v1078_v63 }
  0x41   :  { %859 = vmatpush3.bf16.msra.mxu0 %v1008_v46  ;;  %v807_v46 = vld [vmem:[%s1209_s4] ss:$0 sm:$0xff]  ;;  %s1047_s4 = scalar_lea.vmem %s741_s21, 128 }
  0x42   :  { %860 = vmatprep.subr.bf16.mxu0 %v1009_v47  ;;  %p1048_p8 = scmp.ne.s32.totalorder %s741_s21, %s1047_s4  ;;  %p1053_p10 = scmp.lt.s32.totalorder %s1047_s4, %s1047_s4 }
  0x43   :  { %939 = vmatpush3.bf16.msra.mxu1 %v938_v2 }
  0x44   :  { %940 = vmatprep.subr.bf16.mxu1 %v1078_v63  ;;  %p1054_p11 = por %p1053_p10, %p1052_p9 }
  0x45   :  { %861 = vmatpush3.bf16.msra.mxu0 %v1010_v48 }
  0x46   :  { %862 = vmatprep.subr.bf16.mxu0 %v1011_v49  ;;  %p1055_p12 = pnand %p1054_p11, %p1048_p8 }
  0x47   :  { %942 = vmatpush3.bf16.msra.mxu1 %v941_v5 }
  0x48   :  { %943 = vmatprep.subr.bf16.mxu1 %v1078_v63 }
  0x49   :  { %863 = vmatpush3.bf16.msra.mxu0 %v1012_v54 }
  0x4a   :  { %864 = vmatprep.subr.bf16.mxu0 %v1013_v55 }
  0x4b   :  { %945 = vmatpush3.bf16.msra.mxu1 %v944_v8 }
  0x4c   :  { %946 = vmatprep.subr.bf16.mxu1 %v1078_v63 }
  0x4d   :  { %865 = vmatpush3.bf16.msra.mxu0 %v1014_v56 }
  0x4e   :  { %866 = vmatprep.subr.bf16.mxu0 %v1015_v57 }
  0x4f   :  { %948 = vmatpush3.bf16.msra.mxu1 %v947_v11 }
  0x50   :  { %949 = vmatprep.subr.bf16.mxu1 %v1078_v63 }
  0x51   :  { %867 = vmatpush3.bf16.msra.mxu0 %v1016_v58 }
  0x53   :  { %951 = vmatpush3.bf16.msra.mxu1 %v950_v14 }
  0x54   :  { %580 = vmatmul.mubr.bf16.vlgmr.msra.gmra.mrb[4].mxu0 %v754_v59  ;;  %952 = vmatprep.subr.bf16.mxu1 %v1078_v63 }
  0x57   :  { %954 = vmatpush3.bf16.msra.mxu1 %v953_v17 }
  0x58   :  { %955 = vmatprep.subr.bf16.mxu1 %v1078_v63 }
  0x5b   :  { %957 = vmatpush3.bf16.msra.mxu1 %v956_v20 }
 0x107   :  { %v824_v21 = vpop.f32.mrb[0].mxu0 }
 0x108   :  { %v825_v23 = vpop.f32.mrb[1].mxu0 }
 0x109   :  { %v826_v24 = vadd.f32 %v825_v23, %v824_v21  ;;  %v827_v25 = vpop.f32.mrb[2].mxu0  ;;  %v846_v26 = vpop.f32.mrb[0].mxu1 }
 0x10a   :  { %v828_v27 = vpop.f32.mrb[3].mxu0  ;;  %v847_v28 = vpop.f32.mrb[1].mxu1 }
 0x10b   :  { %v502_v29 = vadd.f32 %v826_v24, %v749_v22  ;;  %v848_v30 = vadd.f32 %v847_v28, %v846_v26  ;;  %v849_v31 = vpop.f32.mrb[2].mxu1 }
 0x10c   :  { %v850_v32 = vpop.f32.mrb[3].mxu1 }
 0x10d   :  { %v542_v33 = vadd.f32 %v848_v30, %v502_v29 }
 0x111   :  { %v621_v34 = vpop.f32.mrb[4].mxu1 }
 0x112   :  { %v897_v35 = vpop.f32.mrb[5].mxu1 }
 0x113   :  { %v624_v36 = vpop.f32.mrb[6].mxu1 }
 0x114   :  { %v898_v37 = vpop.f32.mrb[7].mxu1 }
 0x127   :  { %v868_v38 = vpop.f32.mrb[4].mxu0 }
 0x128   :  { %v869_v39 = vpop.f32.mrb[5].mxu0 }
 0x129   :  { %v870_v40 = vadd.f32 %v869_v39, %v868_v38  ;;  %v871_v41 = vpop.f32.mrb[6].mxu0 }
 0x12a   :  { %v872_v42 = vpop.f32.mrb[7].mxu0 }
 0x12b   :  { %v582_v43 = vadd.f32 %v870_v40, %v542_v33 }
 0x12d   :  { %v622_v44 = vadd.f32 %v621_v34, %v582_v43 }
 0x12f   :  { %v627_v45 = vmax.f32 %v622_v44, 0.0 }
 0x131   :  { %932 = vmatmul.mubr.f32.vlgmr.msra.gmra.mrb[8].mxu1 %v627_v45 }
 0x204   :  { %v717_v47 = vpop.f32.mrb[8].mxu1 }
 0x205   :  { %v718_v48 = vadd.f32 %v807_v46, %v717_v47  ;;  %v933_v49 = vpop.f32.mrb[9].mxu1 }
 0x207   :  { %v722_v50 = vsel %vm721_vm2, %v718_v48, -inf }
 0x208   :  { %723 = vmax.xlane.f32.xlu0 %v722_v50 }
 0x295   :  { %v724_v51 = vpop.xlane.xlu0 %723 }
 0x296   :  { %v725_v52 = vsub.f32 %v718_v48, %v724_v51 }
 0x298   :  { %v726_v53 = vmul.f32 1.442695, %v725_v52 }
 0x29a   :  { %1021 = vpow2.f32 %v726_v53 }
 0x2a4   :  { %v1022_v54 = vpop.eup %1021 }
 0x2a5   :  { %v728_v55 = vsel %vm721_vm2, %v1022_v54, 0.0 }
 0x2a6   :  { %729 = vadd.xlane.f32.xlu0 %v728_v55 }
 0x333   :  { %v730_v56 = vpop.xlane.xlu0 %729 }
 0x334   :  { %1023 = vrcp.f32 %v730_v56 }
 0x33e   :  { %v1024_v57 = vpop.eup %1023 }
 0x33f   :  { %v732_v58 = vmul.f32 %v1024_v57, %v1022_v54 }
 0x341   :  { %733 = vst.msk [vmem:[#allocation5] sm:$0xff] %vm721_vm2, %v732_v58 }
 0x342   :  { %1058 = shalt.err (!%p1055_p12)
}
 0x343   :  { %s1059_s24 = scalar_lea.hbm %s1210_s5, 128 }
 0x344   :  { %p1060_p13 = scmp.ne.s32.totalorder %s1210_s5, %s1059_s24  ;;  %p1063_p0 = scmp.lt.u32.totalorder %s1059_s24, %s1210_s5 }
 0x346   :  { %p1065_p1 = pnand %p1063_p0, %p1060_p13 }
 0x348   :  { %1068 = shalt.err (!%p1065_p1)
}
 0x349   :  { %743 = dma.vmem_to_hbm [thread:$0]  %s741_s21, 128, %s1210_s5, [#allocation4]  }
 0x34a   :  { %1071 = dma.done.wait [#allocation4], 128  }
 0x34b   :  { %1072 = vsyncadd [#allocation4], 4294967168 }
 0x34c   :  { %747 = vsyncpa [#allocation3], 1 }
 0x34d   :  { %748 = vsyncpa [#allocation4], 1 }

</bundles_post_ra>
